<compile_context>
chip_gen: v6e
topology: v6e:2x2x1
jax: 0.10.0
libtpu: 0.0.40
codegen_flags: <defaults>
</compile_context>

<pallas_src>
import jax
import jax.numpy as jnp
from jax.experimental import pallas as pl
from jax.experimental.pallas import tpu as pltpu


def _round_up(x, m):
    return ((x + m - 1) // m) * m


def _sigmoid(x):
    # exp -> EUP, approx reciprocal -> EUP; avoids the f32 divide's VALU cost.
    return pl.reciprocal(1.0 + jnp.exp(-x), approx=True)


def auxiliary_net_kernel(x_ref,
                         w0_ref, b0_ref,
                         w1_ref, b1_ref,
                         wf_ref, bf_ref,
                         out_ref):
    """Fused 3-layer MLP with sigmoid activations on one batch tile.

    x_ref : (tm, in_dim)     bf16  streamed per grid step
    w0_ref: (in_dim, h0)     bf16  resident
    b0_ref: (1, h0)          f32   resident
    w1_ref: (h0, h1)         bf16  resident
    b1_ref: (1, h1)          f32   resident
    wf_ref: (1, h1)          f32   resident (final weight as a row vector)
    bf_ref: (1, 1)           f32   resident
    out_ref: (tm//128, 128)  f32   lane-dense output tile
    """
    x = x_ref[...]  # bf16, fed directly to the MXU

    # Layer 0: bf16 MXU matmul, f32 accumulate.
    h = jnp.dot(x, w0_ref[...], preferred_element_type=jnp.float32)
    h = _sigmoid(h + b0_ref[...])

    # Layer 1: cast the activations once to bf16 so the MXU stays on its native
    # bf16 path (cheap VPU pack vs. a multi-pass f32 matmul).
    h = jnp.dot(h.astype(jnp.bfloat16), w1_ref[...],
                preferred_element_type=jnp.float32)
    h = _sigmoid(h + b1_ref[...])

    # Final layer (out_features == 1): VPU multiply + lane reduction, emitted
    # lane-dense as (tm//128, 128) so the store path writes full vregs instead
    # of tm/8 masked single-lane stores.
    tm, h1 = h.shape
    p = h * wf_ref[...]                         # (tm, h1) f32
    p = p.reshape(tm // 128, 128, h1)           # layout-preserving row split
    y = jnp.sum(p, axis=-1) + bf_ref[...]       # (tm//128, 128) f32
    out_ref[...] = _sigmoid(y).astype(out_ref.dtype)


def _choose_tile_m(batch, tile_m):
    """Batch tile: multiple of 128 (lane-dense out, bf16 row packing)."""
    tile_m = max(1024, _round_up(tile_m, 1024))
    if batch <= 1024:
        # Single tile covering the whole (small) batch.
        return max(128, _round_up(batch, 128))
    # >= 2 "parallel" grid steps so v7x's dual TensorCores both get work;
    # multiple of 1024 keeps the (tm//128, 128) output block in full (8,128)
    # tiles when the grid has more than one step.
    return min(tile_m, _round_up(pl.cdiv(batch, 2), 1024))


def auxiliary_net_forward(x, params, *, tile_m=8192):
    """x: [B, input_size]. params: (W0, b0, W1, b1, Wf, bf).

    Weights are [in_features, out_features]; biases [1, out_features];
    Wf is [h_last, 1]; bf is [1, 1]. Returns [B, 1] float32 probabilities.
    """
    w0, b0, w1, b1, wf, bf = params
    B, in_dim = x.shape
    h0 = w0.shape[1]
    h1 = w1.shape[1]

    # One-time wrapper-side dtype plumbing (never per grid step): bf16 for the
    # MXU operands, f32 for the tiny bias / head vectors.
    x = x.astype(jnp.bfloat16)
    w0 = w0.astype(jnp.bfloat16)
    w1 = w1.astype(jnp.bfloat16)
    b0 = b0.reshape(1, h0).astype(jnp.float32)
    b1 = b1.reshape(1, h1).astype(jnp.float32)
    wf_row = wf.reshape(1, h1).astype(jnp.float32)
    bf = bf.reshape(1, 1).astype(jnp.float32)

    tm = _choose_tile_m(B, tile_m)
    if B < tm:
        # Tiny batch only (< one 128-aligned tile): top up with <=127 zero rows.
        # Real batch sizes never hit this path; the general case relies on
        # Pallas' partial edge block instead of a full-batch HBM->HBM pad copy.
        x = jnp.pad(x, ((0, tm - B), (0, 0)))

    grid_n = pl.cdiv(B, tm)          # partial last block handled by Pallas
    out_rows = grid_n * (tm // 128)  # lane-dense output rows (>= ceil(B/128))

    cost = pl.CostEstimate(
        flops=2 * grid_n * tm * (in_dim * h0 + h0 * h1 + h1),
        transcendentals=grid_n * tm * (h0 + h1 + 1),
        bytes_accessed=(grid_n * tm * in_dim * 2       # x stream (bf16)
                        + out_rows * 128 * 4           # lane-dense output
                        + (in_dim * h0 + h0 * h1) * 2  # resident bf16 weights
                        + (h0 + 2 * h1 + 1) * 4))      # biases + head

    out = pl.pallas_call(
        auxiliary_net_kernel,
        out_shape=jax.ShapeDtypeStruct((out_rows, 128), jnp.float32),
        grid=(grid_n,),
        in_specs=[
            pl.BlockSpec((tm, in_dim), lambda i: (i, 0)),   # x: streamed per tile
            pl.BlockSpec((in_dim, h0), lambda i: (0, 0)),   # W0: resident
            pl.BlockSpec((1, h0),      lambda i: (0, 0)),   # b0: resident
            pl.BlockSpec((h0, h1),     lambda i: (0, 0)),   # W1: resident
            pl.BlockSpec((1, h1),      lambda i: (0, 0)),   # b1: resident
            pl.BlockSpec((1, h1),      lambda i: (0, 0)),   # Wf (row): resident
            pl.BlockSpec((1, 1),       lambda i: (0, 0)),   # bf: resident
        ],
        out_specs=pl.BlockSpec((tm // 128, 128), lambda i: (i, 0)),
        compiler_params=pltpu.CompilerParams(
            dimension_semantics=("parallel",)),
        cost_estimate=cost,
    )(x, w0, b0, w1, b1, wf_row, bf)

    # Lane-dense (rows, 128) flattens in exact batch order; rows past B come
    # from the partial last tile and are sliced off here.
    return out.reshape(-1)[:B].reshape(B, 1)


def init_params(key, input_size, hidden_layers):
    """Deterministic parameter init matching nn.Linear shapes.

    Weights stored as [in_features, out_features] (transpose of torch's
    [out, in]); biases stored as [1, out_features] for clean broadcasting.
    """
    dims = [input_size] + list(hidden_layers)
    keys = jax.random.split(key, 2 * len(dims))
    params = []
    for idx in range(len(dims) - 1):
        fan_in, fan_out = dims[idx], dims[idx + 1]
        bound = 1.0 / jnp.sqrt(fan_in)
        w = jax.random.uniform(keys[2 * idx], (fan_in, fan_out),
                               minval=-bound, maxval=bound, dtype=jnp.float32)
        b = jax.random.uniform(keys[2 * idx + 1], (1, fan_out),
                               minval=-bound, maxval=bound, dtype=jnp.float32)
        params += [w, b]
    fan_in = dims[-1]
    bound = 1.0 / jnp.sqrt(fan_in)
    wf = jax.random.uniform(keys[-2], (fan_in, 1),
                            minval=-bound, maxval=bound, dtype=jnp.float32)
    bf = jax.random.uniform(keys[-1], (1, 1),
                            minval=-bound, maxval=bound, dtype=jnp.float32)
    params += [wf, bf]
    return tuple(params)


def reference_forward(x, params):
    """Pure-JAX reference (f32 math on the same operands the kernel sees)."""
    w0, b0, w1, b1, wf, bf = [p.astype(jnp.float32) for p in params]
    x = x.astype(jnp.float32)
    h = 1.0 / (1.0 + jnp.exp(-(x @ w0 + b0.reshape(1, -1))))
    h = 1.0 / (1.0 + jnp.exp(-(h @ w1 + b1.reshape(1, -1))))
    return 1.0 / (1.0 + jnp.exp(-(h @ wf + bf.reshape(1, -1))))


if __name__ == "__main__":
    key = jax.random.PRNGKey(0)
    k_x, k_p = jax.random.split(key)

    # Small shapes consistent with AuxiliaryNet(input_size=32, hidden_layers=[64, 32]).
    # Batch of 10 also exercises the sub-tile (single 128-row tile) path.
    batch = 10
    input_size = 32
    hidden_layers = [64, 32]

    x_f32 = jax.random.normal(k_x, (batch, input_size), dtype=jnp.float32)
    params_f32 = init_params(k_p, input_size, hidden_layers)

    # Hand the kernel exactly what it streams: bf16 activations and weight
    # matrices (MXU-native), f32 biases / head vector.
    w0, b0, w1, b1, wf, bf = params_f32
    x = x_f32.astype(jnp.bfloat16)
    params = (w0.astype(jnp.bfloat16), b0,
              w1.astype(jnp.bfloat16), b1,
              wf, bf)

    out = jax.block_until_ready(auxiliary_net_forward(x, params))

    # Reference uses the same bf16-cast operands upcast to f32; the only kernel
    # deltas are the approx EUP reciprocal in the sigmoid and the bf16 cast of
    # the layer-0 activations feeding the second MXU matmul.
    ref = reference_forward(x, params)

    assert out.shape == (batch, 1), out.shape
    max_err = float(jnp.max(jnp.abs(out - ref)))
    assert jnp.allclose(out, ref, atol=5e-3, rtol=5e-3), f"max err {max_err}"

    print("KERNEL_OK")
</pallas_src>

<mosaic_0001>
module attributes {stable_mosaic.version = 11 : i64} {
  func.func @auxiliary_net_kernel(%arg0: i32, %arg1: memref<128x32xbf16, #tpu.memory_space<vmem>>, %arg2: memref<32x64xbf16, #tpu.memory_space<vmem>>, %arg3: memref<1x64xf32, #tpu.memory_space<vmem>>, %arg4: memref<64x32xbf16, #tpu.memory_space<vmem>>, %arg5: memref<1x32xf32, #tpu.memory_space<vmem>>, %arg6: memref<1x32xf32, #tpu.memory_space<vmem>>, %arg7: memref<1x1xf32, #tpu.memory_space<vmem>>, %arg8: memref<1x128xf32, #tpu.memory_space<vmem>>) attributes {dimension_semantics = [#tpu.dimension_semantics<parallel>], iteration_bounds = array<i64: 1>, scalar_prefetch = 0 : i64, scratch_operands = 0 : i64, tpu.core_type = #tpu.core_type<tc>, window_params = [{transform_indices = @transform_0, window_bounds = array<i64: 128, 32>}, {pipeline_mode = #tpu.pipeline_mode<synchronous>, transform_indices = @transform_1, window_bounds = array<i64: 32, 64>}, {pipeline_mode = #tpu.pipeline_mode<synchronous>, transform_indices = @transform_2, window_bounds = array<i64: 1, 64>}, {pipeline_mode = #tpu.pipeline_mode<synchronous>, transform_indices = @transform_3, window_bounds = array<i64: 64, 32>}, {pipeline_mode = #tpu.pipeline_mode<synchronous>, transform_indices = @transform_4, window_bounds = array<i64: 1, 32>}, {pipeline_mode = #tpu.pipeline_mode<synchronous>, transform_indices = @transform_5, window_bounds = array<i64: 1, 32>}, {pipeline_mode = #tpu.pipeline_mode<synchronous>, transform_indices = @transform_6, window_bounds = array<i64: 1, 1>}, {transform_indices = @transform_7, window_bounds = array<i64: 1, 128>}]} {
    %c0 = arith.constant 0 : index
    %c0_0 = arith.constant 0 : index
    %0 = vector.load %arg1[%c0, %c0_0] : memref<128x32xbf16, #tpu.memory_space<vmem>>, vector<128x32xbf16>
    %c0_1 = arith.constant 0 : index
    %c0_2 = arith.constant 0 : index
    %1 = vector.load %arg2[%c0_1, %c0_2] : memref<32x64xbf16, #tpu.memory_space<vmem>>, vector<32x64xbf16>
    %cst = arith.constant dense<0.000000e+00> : vector<128x64xf32>
    %2 = tpu.matmul %0, %1, %cst {dimension_numbers = #tpu.dot_dimension_numbers<[1], [0], [0], [1], [0, 0, 1, 1], [], []>} : vector<128x32xbf16>, vector<32x64xbf16>, vector<128x64xf32> -> vector<128x64xf32>
    %c0_3 = arith.constant 0 : index
    %c0_4 = arith.constant 0 : index
    %3 = vector.load %arg3[%c0_3, %c0_4] : memref<1x64xf32, #tpu.memory_space<vmem>>, vector<1x64xf32>
    %4 = vector.broadcast %3 : vector<1x64xf32> to vector<128x64xf32>
    %5 = arith.addf %2, %4 : vector<128x64xf32>
    %cst_5 = arith.constant 0.000000e+00 : f32
    %6 = vector.broadcast %cst_5 : f32 to vector<128x64xf32>
    %7 = arith.subf %6, %5 : vector<128x64xf32>
    %8 = math.exp %7 : vector<128x64xf32>
    %cst_6 = arith.constant 1.000000e+00 : f32
    %9 = vector.broadcast %cst_6 : f32 to vector<128x64xf32>
    %10 = arith.addf %9, %8 : vector<128x64xf32>
    %11 = tpu.reciprocal %10 {approx = true} : vector<128x64xf32> -> vector<128x64xf32>
    %12 = arith.truncf %11 : vector<128x64xf32> to vector<128x64xbf16>
    %c0_7 = arith.constant 0 : index
    %c0_8 = arith.constant 0 : index
    %13 = vector.load %arg4[%c0_7, %c0_8] : memref<64x32xbf16, #tpu.memory_space<vmem>>, vector<64x32xbf16>
    %cst_9 = arith.constant dense<0.000000e+00> : vector<128x32xf32>
    %14 = tpu.matmul %12, %13, %cst_9 {dimension_numbers = #tpu.dot_dimension_numbers<[1], [0], [0], [1], [0, 0, 1, 1], [], []>} : vector<128x64xbf16>, vector<64x32xbf16>, vector<128x32xf32> -> vector<128x32xf32>
    %c0_10 = arith.constant 0 : index
    %c0_11 = arith.constant 0 : index
    %15 = vector.load %arg5[%c0_10, %c0_11] : memref<1x32xf32, #tpu.memory_space<vmem>>, vector<1x32xf32>
    %16 = vector.broadcast %15 : vector<1x32xf32> to vector<128x32xf32>
    %17 = arith.addf %14, %16 : vector<128x32xf32>
    %cst_12 = arith.constant 0.000000e+00 : f32
    %18 = vector.broadcast %cst_12 : f32 to vector<128x32xf32>
    %19 = arith.subf %18, %17 : vector<128x32xf32>
    %20 = math.exp %19 : vector<128x32xf32>
    %cst_13 = arith.constant 1.000000e+00 : f32
    %21 = vector.broadcast %cst_13 : f32 to vector<128x32xf32>
    %22 = arith.addf %21, %20 : vector<128x32xf32>
    %23 = tpu.reciprocal %22 {approx = true} : vector<128x32xf32> -> vector<128x32xf32>
    %c0_14 = arith.constant 0 : index
    %c0_15 = arith.constant 0 : index
    %24 = vector.load %arg6[%c0_14, %c0_15] : memref<1x32xf32, #tpu.memory_space<vmem>>, vector<1x32xf32>
    %25 = vector.broadcast %24 : vector<1x32xf32> to vector<128x32xf32>
    %26 = arith.mulf %23, %25 : vector<128x32xf32>
    %27 = vector.shape_cast %26 : vector<128x32xf32> to vector<1x128x32xf32>
    %cst_16 = arith.constant dense<0.000000e+00> : vector<1x128xf32>
    %28 = vector.multi_reduction <add>, %27, %cst_16 [2] : vector<1x128x32xf32> to vector<1x128xf32>
    %c0_17 = arith.constant 0 : index
    %c0_18 = arith.constant 0 : index
    %29 = vector.load %arg7[%c0_17, %c0_18] : memref<1x1xf32, #tpu.memory_space<vmem>>, vector<1x1xf32>
    %30 = vector.broadcast %29 : vector<1x1xf32> to vector<1x128xf32>
    %31 = arith.addf %28, %30 : vector<1x128xf32>
    %cst_19 = arith.constant 0.000000e+00 : f32
    %32 = vector.broadcast %cst_19 : f32 to vector<1x128xf32>
    %33 = arith.subf %32, %31 : vector<1x128xf32>
    %34 = math.exp %33 : vector<1x128xf32>
    %cst_20 = arith.constant 1.000000e+00 : f32
    %35 = vector.broadcast %cst_20 : f32 to vector<1x128xf32>
    %36 = arith.addf %35, %34 : vector<1x128xf32>
    %37 = tpu.reciprocal %36 {approx = true} : vector<1x128xf32> -> vector<1x128xf32>
    %c0_21 = arith.constant 0 : index
    %c0_22 = arith.constant 0 : index
    %38 = vector.load %arg8[%c0_21, %c0_22] : memref<1x128xf32, #tpu.memory_space<vmem>>, vector<1x128xf32>
    tpu.vector_store %arg8[%c0_21, %c0_22], %37 {strides = array<i32>} : memref<1x128xf32, #tpu.memory_space<vmem>>, vector<1x128xf32>,
    return
  }
  func.func @transform_0(%arg0: i32) -> (i32, i32) {
    %c0_i32 = arith.constant 0 : i32
    %c0_i32_0 = arith.constant 0 : i32
    return %arg0, %c0_i32 : i32, i32
  }
  func.func @transform_1(%arg0: i32) -> (i32, i32) {
    %c0_i32 = arith.constant 0 : i32
    %c0_i32_0 = arith.constant 0 : i32
    %c0_i32_1 = arith.constant 0 : i32
    return %c0_i32, %c0_i32_0 : i32, i32
  }
  func.func @transform_2(%arg0: i32) -> (i32, i32) {
    %c0_i32 = arith.constant 0 : i32
    %c0_i32_0 = arith.constant 0 : i32
    %c0_i32_1 = arith.constant 0 : i32
    return %c0_i32, %c0_i32_0 : i32, i32
  }
  func.func @transform_3(%arg0: i32) -> (i32, i32) {
    %c0_i32 = arith.constant 0 : i32
    %c0_i32_0 = arith.constant 0 : i32
    %c0_i32_1 = arith.constant 0 : i32
    return %c0_i32, %c0_i32_0 : i32, i32
  }
  func.func @transform_4(%arg0: i32) -> (i32, i32) {
    %c0_i32 = arith.constant 0 : i32
    %c0_i32_0 = arith.constant 0 : i32
    %c0_i32_1 = arith.constant 0 : i32
    return %c0_i32, %c0_i32_0 : i32, i32
  }
  func.func @transform_5(%arg0: i32) -> (i32, i32) {
    %c0_i32 = arith.constant 0 : i32
    %c0_i32_0 = arith.constant 0 : i32
    %c0_i32_1 = arith.constant 0 : i32
    return %c0_i32, %c0_i32_0 : i32, i32
  }
  func.func @transform_6(%arg0: i32) -> (i32, i32) {
    %c0_i32 = arith.constant 0 : i32
    %c0_i32_0 = arith.constant 0 : i32
    %c0_i32_1 = arith.constant 0 : i32
    return %c0_i32, %c0_i32_0 : i32, i32
  }
  func.func @transform_7(%arg0: i32) -> (i32, i32) {
    %c0_i32 = arith.constant 0 : i32
    %c0_i32_0 = arith.constant 0 : i32
    return %arg0, %c0_i32 : i32, i32
  }
}

</mosaic_0001>

<bundles_post_ra>
// kernel: tpu_custom_call.1
= control target key start
LH: loop header
LB: loop body
LE: loop exit
PB: predicated region body
PF: predicated region fallthrough
CT: control target
= control target key end

     0   :  { %s1453_s0 = inlined_call_operand.vmem [shape: bf16[128,32], index: 0, kind: input, shape index: {}]   ;;  %s1454_s1 = inlined_call_operand.vmem [shape: bf16[32,64], index: 1, kind: input, shape index: {}]   ;;  %s1455_s2 = inlined_call_operand.vmem [shape: f32[1,64], index: 2, kind: input, shape index: {}]   ;;  %s1456_s3 = inlined_call_operand.vmem [shape: bf16[64,32], index: 3, kind: input, shape index: {}]   ;;  %s1457_s4 = inlined_call_operand.vmem [shape: f32[1,32], index: 4, kind: input, shape index: {}]   ;;  %s1458_s5 = inlined_call_operand.vmem [shape: f32[1,32], index: 5, kind: input, shape index: {}]   ;;  %s1459_s6 = inlined_call_operand.<no memory space> [shape: f32[1,1], index: 6, kind: input, shape index: {}]   ;;  %s1460_s7 = inlined_call_operand.hbm [shape: f32[1,128], index: 7, kind: output, shape index: {}]  }
   0x1   :  { %v12_v0 = vstv %s1459_s6 }
   0x2   :  { %13 = vst [vmem:[#allocation2] sm:$0x1] %v12_v0 }
   0x3   :  { %v983_v1 = vld [vmem:[%s1454_s1 + $0x8] sm:$0xff]   ;;  %v984_v2 = vld [vmem:[%s1454_s1] sm:$0xff]   ;;  %vm109_vm0 = vcmask 261120   ;;  %v987_v5 = vld [vmem:[%s1453_s0 + $0x10] sm:$0xff]  }
   0x4   :  { %935 = vmatprep.subr.bf16.mxu0 %v983_v1  ;;  %v985_v3 = vld [vmem:[%s1453_s0] sm:$0xff]   ;;  %v986_v4 = vld [vmem:[%s1453_s0 + $0x8] sm:$0xff]  }
   0x5   :  { %936 = vmatpush3.bf16.msra.mxu0 %v983_v1  ;;  %939 = vmatprep.mubr.msk.bf16.mxu0 %vm109_vm0, %v985_v3 }
   0x6   :  { %937 = vmatprep.subr.bf16.mxu0 %v984_v2 }
   0x9   :  { %938 = vmatpush3.bf16.msra.mxu0 %v984_v2 }
   0xc   :  { %940 = vmatmul.mubr.msk.bf16.vlgmr.msra.gmra.mxu0 %vm109_vm0, %v986_v4 }
   0xd   :  { %943 = vmatprep.mubr.msk.bf16.mxu0 %vm109_vm0, %v987_v5 }
   0xe   :  { %14 = vsyncpa [#allocation4], 0  ;;  %v988_v6 = vld [vmem:[%s1453_s0 + $0x18] sm:$0xff]   ;;  %v989_v7 = vld [vmem:[%s1453_s0 + $0x20] sm:$0xff]   ;;  %vm358_vm1 = vcmask 523264   ;;  %vm764_vm2 = vcmask 130112  }
   0xf   :  { %v990_v8 = vld [vmem:[%s1453_s0 + $0x28] sm:$0xff]   ;;  %v991_v9 = vld [vmem:[%s1453_s0 + $0x30] sm:$0xff]   ;;  %v992_v10 = vld [vmem:[%s1453_s0 + $0x38] sm:$0xff]   ;;  %vm771_vm3 = vcmask 195712   ;;  %vm778_vm4 = vcmask 261312   ;;  %vm785_vm5 = vcmask 326912  }
  0x10   :  { %v993_v11 = vld [vmem:[%s1456_s3 + $0x18] sm:$0xff]   ;;  %v994_v12 = vld [vmem:[%s1456_s3 + $0x10] sm:$0xff]   ;;  %v995_v13 = vld [vmem:[%s1456_s3 + $0x8] sm:$0xff]   ;;  %vm792_vm6 = vcmask 392512   ;;  %vm799_vm7 = vcmask 458112   ;;  %vm806_vm8 = vcmask 523712  }
  0x11   :  { %955 = vmatprep.subr.bf16.mxu1 %v993_v11  ;;  %v996_v14 = vld [vmem:[%s1456_s3] sm:$0xff]   ;;  %vm813_vm9 = vcmask 589312   ;;  %vm820_vm10 = vcmask 654912   ;;  %vm827_vm11 = vcmask 720512   ;;  %vm834_vm12 = vcmask 786112  }
  0x12   :  { %956 = vmatpush3.bf16.msra.mxu1 %v993_v11  ;;  %v1309_v15 = vld [vmem:[%s1455_s2] ss:$0 sm:$0xff]  ;;  %vm841_vm13 = vcmask 851712   ;;  %vm848_vm14 = vcmask 917312   ;;  %vm855_vm15 = vcmask 982912  }
  0x13   :  { %957 = vmatprep.subr.bf16.mxu1 %v994_v12 }
  0x14   :  { %944 = vmatmul.mubr.msk.bf16.gmra.mxu0 %vm109_vm0, %v988_v6 }
  0x15   :  { %947 = vmatprep.mubr.msk.bf16.mxu0 %vm109_vm0, %v989_v7 }
  0x16   :  { %958 = vmatpush3.bf16.msra.mxu1 %v994_v12 }
  0x17   :  { %959 = vmatprep.subr.bf16.mxu1 %v995_v13 }
  0x1a   :  { %960 = vmatpush3.bf16.msra.mxu1 %v995_v13 }
  0x1b   :  { %961 = vmatprep.subr.bf16.mxu1 %v996_v14 }
  0x1c   :  { %948 = vmatmul.mubr.msk.bf16.gmra.mxu0 %vm109_vm0, %v990_v8 }
  0x1d   :  { %951 = vmatprep.mubr.msk.bf16.mxu0 %vm109_vm0, %v991_v9 }
  0x1e   :  { %962 = vmatpush3.bf16.msra.mxu1 %v996_v14 }
  0x24   :  { %952 = vmatmul.mubr.msk.bf16.gmra.mxu0 %vm109_vm0, %v992_v10 }
  0xcc   :  { %v941_v16 = vpop.f32.mrf.mxu0 }
  0xcd   :  { %v177_v17 = vadd.f32 %v941_v16, %v1309_v15 }
  0xce   :  { %v168_v18 = vpop.f32.mrf.mxu0 }
  0xcf   :  { %v233_v19 = vsub.f32 0.0, %v177_v17  ;;  %v169_v20 = vadd.f32 %v1309_v15, %v168_v18 }
  0xd0   :  { %v942_v21 = vpop.f32.mrf.mxu0 }
  0xd1   :  { %v251_v22 = vmul.f32 1.442695, %v233_v19  ;;  %v231_v23 = vsub.f32 0.0, %v169_v20  ;;  %v180_v24 = vadd.f32 %v942_v21, %v1309_v15 }
  0xd2   :  { %v171_v25 = vpop.f32.mrf.mxu0 }
  0xd3   :  { %997 = vpow2.f32 %v251_v22  ;;  %v247_v26 = vmul.f32 1.442695, %v231_v23  ;;  %v234_v27 = vsub.f32 0.0, %v180_v24  ;;  %v172_v28 = vadd.f32 %v1309_v15, %v171_v25 }
  0xd4   :  { %v945_v29 = vpop.f32.mrf.mxu0 }
  0xd5   :  { %999 = vpow2.f32 %v247_v26  ;;  %v253_v30 = vmul.f32 1.442695, %v234_v27  ;;  %v232_v31 = vsub.f32 0.0, %v172_v28  ;;  %v193_v32 = vadd.f32 %v945_v29, %v1309_v15 }
  0xd6   :  { %v184_v33 = vpop.f32.mrf.mxu0 }
  0xd7   :  { %1001 = vpow2.f32 %v253_v30  ;;  %v249_v34 = vmul.f32 1.442695, %v232_v31  ;;  %v237_v35 = vsub.f32 0.0, %v193_v32  ;;  %v185_v36 = vadd.f32 %v1309_v15, %v184_v33 }
  0xd8   :  { %v946_v37 = vpop.f32.mrf.mxu0 }
  0xd9   :  { %1003 = vpow2.f32 %v249_v34  ;;  %v259_v38 = vmul.f32 1.442695, %v237_v35  ;;  %v235_v39 = vsub.f32 0.0, %v185_v36  ;;  %v196_v40 = vadd.f32 %v946_v37, %v1309_v15 }
  0xda   :  { %v187_v41 = vpop.f32.mrf.mxu0 }
  0xdb   :  { %1005 = vpow2.f32 %v259_v38  ;;  %v255_v42 = vmul.f32 1.442695, %v235_v39  ;;  %v238_v43 = vsub.f32 0.0, %v196_v40  ;;  %v188_v44 = vadd.f32 %v1309_v15, %v187_v41 }
  0xdc   :  { %v949_v45 = vpop.f32.mrf.mxu0 }
  0xdd   :  { %1007 = vpow2.f32 %v255_v42  ;;  %v261_v46 = vmul.f32 1.442695, %v238_v43  ;;  %v236_v47 = vsub.f32 0.0, %v188_v44  ;;  %v209_v48 = vadd.f32 %v949_v45, %v1309_v15 }
  0xde   :  { %v200_v49 = vpop.f32.mrf.mxu0 }
  0xdf   :  { %1009 = vpow2.f32 %v261_v46  ;;  %v257_v50 = vmul.f32 1.442695, %v236_v47  ;;  %v241_v51 = vsub.f32 0.0, %v209_v48  ;;  %v201_v52 = vadd.f32 %v1309_v15, %v200_v49 }
  0xe0   :  { %v998_v53 = vpop.eup %997  ;;  %v950_v54 = vpop.f32.mrf.mxu0 }
  0xe1   :  { %v281_v55 = vadd.f32 1.0, %v998_v53  ;;  %1011 = vpow2.f32 %v257_v50  ;;  %v267_v56 = vmul.f32 1.442695, %v241_v51  ;;  %v239_v57 = vsub.f32 0.0, %v201_v52 }
  0xe2   :  { %v1000_v58 = vpop.eup %999  ;;  %v212_v59 = vadd.f32 %v950_v54, %v1309_v15  ;;  %v203_v60 = vpop.f32.mrf.mxu0 }
  0xe3   :  { %1013 = vrcp.f32 %v281_v55  ;;  %v279_v61 = vadd.f32 1.0, %v1000_v58  ;;  %v263_v62 = vmul.f32 1.442695, %v239_v57  ;;  %v204_v63 = vadd.f32 %v1309_v15, %v203_v60 }
  0xe4   :  { %v1002_v0 = vpop.eup %1001  ;;  %1015 = vpow2.f32 %v267_v56  ;;  %v242_v1 = vsub.f32 0.0, %v212_v59  ;;  %v953_v2 = vpop.f32.mrf.mxu0 }
  0xe5   :  { %1017 = vrcp.f32 %v279_v61  ;;  %v282_v3 = vadd.f32 1.0, %v1002_v0  ;;  %v240_v4 = vsub.f32 0.0, %v204_v63  ;;  %v225_v5 = vadd.f32 %v953_v2, %v1309_v15 }
  0xe6   :  { %v1004_v6 = vpop.eup %1003  ;;  %1019 = vpow2.f32 %v263_v62  ;;  %v269_v7 = vmul.f32 1.442695, %v242_v1  ;;  %v216_v8 = vpop.f32.mrf.mxu0 }
  0xe7   :  { %1021 = vrcp.f32 %v282_v3  ;;  %v280_v9 = vadd.f32 1.0, %v1004_v6  ;;  %v265_v10 = vmul.f32 1.442695, %v240_v4  ;;  %v245_v11 = vsub.f32 0.0, %v225_v5 }
  0xe8   :  { %v1006_v12 = vpop.eup %1005  ;;  %1023 = vpow2.f32 %v269_v7  ;;  %v217_v13 = vadd.f32 %v1309_v15, %v216_v8  ;;  %v954_v14 = vpop.f32.mrf.mxu0  ;;  %v1211_v8 = vmov 0  }
  0xe9   :  { %1025 = vrcp.f32 %v280_v9  ;;  %v285_v16 = vadd.f32 1.0, %v1006_v12  ;;  %v275_v17 = vmul.f32 1.442695, %v245_v11  ;;  %v228_v18 = vadd.f32 %v954_v14, %v1309_v15  ;;  %981 = vset.pattern.permute.xlu1 %v1211_v8  ;;  %982 = vset.pattern.permute.xlu0 %v1211_v8  ;;  %v1338_v9 = vld [vmem:[%s1457_s4] ss:$0 sm:$0xff] }
  0xea   :  { %v1008_v19 = vpop.eup %1007  ;;  %1027 = vpow2.f32 %v265_v10  ;;  %v243_v20 = vsub.f32 0.0, %v217_v13  ;;  %v219_v21 = vpop.f32.mrf.mxu0 }
  0xeb   :  { %1029 = vrcp.f32 %v285_v16  ;;  %v283_v22 = vadd.f32 1.0, %v1008_v19  ;;  %v246_v23 = vsub.f32 0.0, %v228_v18  ;;  %v220_v24 = vadd.f32 %v1309_v15, %v219_v21 }
  0xec   :  { %v1010_v25 = vpop.eup %1009  ;;  %1031 = vpow2.f32 %v275_v17  ;;  %v271_v26 = vmul.f32 1.442695, %v243_v20 }
  0xed   :  { %1033 = vrcp.f32 %v283_v22  ;;  %v286_v27 = vadd.f32 1.0, %v1010_v25  ;;  %v277_v28 = vmul.f32 1.442695, %v246_v23  ;;  %v244_v29 = vsub.f32 0.0, %v220_v24 }
  0xee   :  { %v1012_v30 = vpop.eup %1011  ;;  %1035 = vpow2.f32 %v271_v26 }
  0xef   :  { %1037 = vrcp.f32 %v286_v27  ;;  %v284_v31 = vadd.f32 1.0, %v1012_v30  ;;  %v273_v32 = vmul.f32 1.442695, %v244_v29 }
  0xf0   :  { %v1014_v33 = vpop.eup %1013  ;;  %1039 = vpow2.f32 %v277_v28 }
  0xf1   :  { %v1016_v34 = vpop.eup %1015  ;;  %1041 = vrcp.f32 %v284_v31 }
  0xf2   :  { %v1018_v35 = vpop.eup %1017  ;;  %v289_v36 = vadd.f32 1.0, %v1016_v34  ;;  %1043 = vpow2.f32 %v273_v32 }
  0xf3   :  { %v1020_v15 = vpop.eup %1019 }
  0xf4   :  { %v1022_v37 = vpop.eup %1021  ;;  %v287_v38 = vadd.f32 1.0, %v1020_v15  ;;  %1045 = vrcp.f32 %v289_v36 }
  0xf5   :  { %v1024_v39 = vpop.eup %1023  ;;  %v312_v46 = vpack.c.bf16 %v1022_v37, %v1014_v33 }
  0xf6   :  { %v1026_v40 = vpop.eup %1025  ;;  %v290_v41 = vadd.f32 1.0, %v1024_v39  ;;  %1047 = vrcp.f32 %v287_v38 }
  0xf7   :  { %v1028_v42 = vpop.eup %1027  ;;  %v311_v43 = vpack.c.bf16 %v1026_v40, %v1018_v35 }
  0xf8   :  { %v1030_v44 = vpop.eup %1029  ;;  %1049 = vrcp.f32 %v290_v41  ;;  %v288_v45 = vadd.f32 1.0, %v1028_v42 }
  0xf9   :  { %v1032_v47 = vpop.eup %1031  ;;  %963 = vmatprep.mubr.msk.bf16.mxu1 %vm358_vm1, %v311_v43 }
  0xfa   :  { %v1034_v48 = vpop.eup %1033  ;;  %1051 = vrcp.f32 %v288_v45  ;;  %v293_v49 = vadd.f32 1.0, %v1032_v47  ;;  %964 = vmatmul.mubr.msk.bf16.vlgmr.msra.gmra.mxu1 %vm358_vm1, %v312_v46 }
  0xfb   :  { %v1036_v50 = vpop.eup %1035 }
  0xfc   :  { %v1038_v51 = vpop.eup %1037  ;;  %v291_v52 = vadd.f32 1.0, %v1036_v50  ;;  %1053 = vrcp.f32 %v293_v49 }
  0xfd   :  { %v1040_v53 = vpop.eup %1039  ;;  %v314_v59 = vpack.c.bf16 %v1038_v51, %v1030_v44 }
  0xfe   :  { %v1042_v54 = vpop.eup %1041  ;;  %v294_v55 = vadd.f32 1.0, %v1040_v53  ;;  %1055 = vrcp.f32 %v291_v52 }
  0xff   :  { %v1044_v56 = vpop.eup %1043  ;;  %v313_v57 = vpack.c.bf16 %v1042_v54, %v1034_v48 }
 0x100   :  { %1057 = vrcp.f32 %v294_v55  ;;  %v292_v58 = vadd.f32 1.0, %v1044_v56 }
 0x101   :  { %967 = vmatprep.mubr.msk.bf16.mxu1 %vm358_vm1, %v313_v57  ;;  %v1046_v60 = vpop.eup %1045 }
 0x102   :  { %1059 = vrcp.f32 %v292_v58  ;;  %968 = vmatmul.mubr.msk.bf16.gmra.mxu1 %vm358_vm1, %v314_v59 }
 0x103   :  { %v1048_v61 = vpop.eup %1047 }
 0x105   :  { %v1050_v62 = vpop.eup %1049 }
 0x106   :  { %v316_v0 = vpack.c.bf16 %v1050_v62, %v1046_v60 }
 0x107   :  { %v1052_v63 = vpop.eup %1051 }
 0x108   :  { %v315_v1 = vpack.c.bf16 %v1052_v63, %v1048_v61 }
 0x109   :  { %v1054_v2 = vpop.eup %1053 }
 0x10a   :  { %971 = vmatprep.mubr.msk.bf16.mxu1 %vm358_vm1, %v315_v1 }
 0x10b   :  { %972 = vmatmul.mubr.msk.bf16.gmra.mxu1 %vm358_vm1, %v316_v0  ;;  %v1056_v3 = vpop.eup %1055 }
 0x10d   :  { %v1058_v4 = vpop.eup %1057 }
 0x10e   :  { %v318_v6 = vpack.c.bf16 %v1058_v4, %v1054_v2 }
 0x10f   :  { %v1060_v5 = vpop.eup %1059 }
 0x110   :  { %v317_v7 = vpack.c.bf16 %v1060_v5, %v1056_v3 }
 0x112   :  { %975 = vmatprep.mubr.msk.bf16.mxu1 %vm358_vm1, %v317_v7 }
 0x113   :  { %976 = vmatmul.mubr.msk.bf16.gmra.mxu1 %vm358_vm1, %v318_v6 }
 0x1ba   :  { %v965_v10 = vpop.f32.mrf.mxu1 }
 0x1bb   :  { %v426_v11 = vadd.f32 %v965_v10, %v1338_v9 }
 0x1bc   :  { %v417_v12 = vpop.f32.mrf.mxu1 }
 0x1bd   :  { %v482_v13 = vsub.f32 0.0, %v426_v11  ;;  %v418_v14 = vadd.f32 %v1338_v9, %v417_v12 }
 0x1be   :  { %v966_v16 = vpop.f32.mrf.mxu1 }
 0x1bf   :  { %v500_v17 = vmul.f32 1.442695, %v482_v13  ;;  %v480_v18 = vsub.f32 0.0, %v418_v14  ;;  %v429_v19 = vadd.f32 %v966_v16, %v1338_v9 }
 0x1c0   :  { %v420_v20 = vpop.f32.mrf.mxu1 }
 0x1c1   :  { %1061 = vpow2.f32 %v500_v17  ;;  %v496_v21 = vmul.f32 1.442695, %v480_v18  ;;  %v483_v22 = vsub.f32 0.0, %v429_v19  ;;  %v421_v23 = vadd.f32 %v1338_v9, %v420_v20 }
 0x1c2   :  { %v969_v24 = vpop.f32.mrf.mxu1 }
 0x1c3   :  { %1063 = vpow2.f32 %v496_v21  ;;  %v502_v25 = vmul.f32 1.442695, %v483_v22  ;;  %v481_v26 = vsub.f32 0.0, %v421_v23  ;;  %v442_v27 = vadd.f32 %v969_v24, %v1338_v9  ;;  %v1359_v23 = vld [vmem:[%s1458_s5] ss:$0 sm:$0xff]  ;;  %s1212_s5 = smov [#allocation3]  }
 0x1c4   :  { %v433_v28 = vpop.f32.mrf.mxu1  ;;  %s872_s8 = sshll.u32 %s1212_s5, 4  ;;  %s873_s8 = int_to_ptr.vmem [resolvable:$true] %s872_s8 }
 0x1c5   :  { %1065 = vpow2.f32 %v502_v25  ;;  %v498_v29 = vmul.f32 1.442695, %v481_v26  ;;  %v486_v30 = vsub.f32 0.0, %v442_v27  ;;  %v434_v31 = vadd.f32 %v1338_v9, %v433_v28  ;;  %s1189_s6 = scalar_lea.vmem %s873_s8, 16  ;;  %s1193_s9 = scalar_lea.vmem %s873_s8, 32 }
 0x1c6   :  { %v970_v32 = vpop.f32.mrf.mxu1  ;;  %p1190_p0 = scmp.ne.s32.totalorder %s873_s8, %s1189_s6  ;;  %p1194_p1 = scmp.lt.s32.totalorder %s873_s8, %s873_s8 }
 0x1c7   :  { %1067 = vpow2.f32 %v498_v29  ;;  %v508_v33 = vmul.f32 1.442695, %v486_v30  ;;  %v484_v34 = vsub.f32 0.0, %v434_v31  ;;  %v445_v35 = vadd.f32 %v970_v32, %v1338_v9  ;;  %p1195_p2 = scmp.lt.s32.totalorder %s1193_s9, %s1189_s6 }
 0x1c8   :  { %v436_v36 = vpop.f32.mrf.mxu1 }
 0x1c9   :  { %1069 = vpow2.f32 %v508_v33  ;;  %v504_v15 = vmul.f32 1.442695, %v484_v34  ;;  %v487_v37 = vsub.f32 0.0, %v445_v35  ;;  %v437_v38 = vadd.f32 %v1338_v9, %v436_v36  ;;  %p1196_p3 = por %p1195_p2, %p1194_p1 }
 0x1cb   :  { %1071 = vpow2.f32 %v504_v15  ;;  %v510_v39 = vmul.f32 1.442695, %v487_v37  ;;  %v485_v40 = vsub.f32 0.0, %v437_v38  ;;  %v973_v41 = vpop.f32.mrf.mxu1  ;;  %p1197_p4 = pnand %p1196_p3, %p1190_p0 }
 0x1cc   :  { %v458_v42 = vadd.f32 %v973_v41, %v1338_v9 }
 0x1cd   :  { %1073 = vpow2.f32 %v510_v39  ;;  %v506_v43 = vmul.f32 1.442695, %v485_v40  ;;  %v449_v44 = vpop.f32.mrf.mxu1 }
 0x1ce   :  { %v1062_v45 = vpop.eup %1061  ;;  %v490_v46 = vsub.f32 0.0, %v458_v42  ;;  %v450_v47 = vadd.f32 %v1338_v9, %v449_v44 }
 0x1cf   :  { %v530_v48 = vadd.f32 1.0, %v1062_v45  ;;  %1075 = vpow2.f32 %v506_v43  ;;  %v974_v49 = vpop.f32.mrf.mxu1 }
 0x1d0   :  { %v1064_v50 = vpop.eup %1063  ;;  %v516_v51 = vmul.f32 1.442695, %v490_v46  ;;  %v488_v52 = vsub.f32 0.0, %v450_v47  ;;  %v461_v53 = vadd.f32 %v974_v49, %v1338_v9 }
 0x1d1   :  { %1077 = vrcp.f32 %v530_v48  ;;  %v528_v54 = vadd.f32 1.0, %v1064_v50  ;;  %v452_v55 = vpop.f32.mrf.mxu1 }
 0x1d2   :  { %v1066_v56 = vpop.eup %1065  ;;  %1079 = vpow2.f32 %v516_v51  ;;  %v512_v57 = vmul.f32 1.442695, %v488_v52  ;;  %v491_v58 = vsub.f32 0.0, %v461_v53  ;;  %v453_v59 = vadd.f32 %v1338_v9, %v452_v55 }
 0x1d3   :  { %1081 = vrcp.f32 %v528_v54  ;;  %v531_v60 = vadd.f32 1.0, %v1066_v56  ;;  %v977_v61 = vpop.f32.mrf.mxu1 }
 0x1d4   :  { %v1068_v62 = vpop.eup %1067  ;;  %1083 = vpow2.f32 %v512_v57  ;;  %v518_v63 = vmul.f32 1.442695, %v491_v58  ;;  %v489_v0 = vsub.f32 0.0, %v453_v59  ;;  %v474_v1 = vadd.f32 %v977_v61, %v1338_v9 }
 0x1d5   :  { %1085 = vrcp.f32 %v531_v60  ;;  %v529_v2 = vadd.f32 1.0, %v1068_v62  ;;  %v465_v3 = vpop.f32.mrf.mxu1 }
 0x1d6   :  { %v1070_v4 = vpop.eup %1069  ;;  %1087 = vpow2.f32 %v518_v63  ;;  %v514_v5 = vmul.f32 1.442695, %v489_v0  ;;  %v494_v6 = vsub.f32 0.0, %v474_v1  ;;  %v466_v7 = vadd.f32 %v1338_v9, %v465_v3 }
 0x1d7   :  { %1089 = vrcp.f32 %v529_v2  ;;  %v534_v8 = vadd.f32 1.0, %v1070_v4  ;;  %v978_v10 = vpop.f32.mrf.mxu1 }
 0x1d8   :  { %v1072_v11 = vpop.eup %1071  ;;  %1091 = vpow2.f32 %v514_v5  ;;  %v524_v12 = vmul.f32 1.442695, %v494_v6  ;;  %v492_v13 = vsub.f32 0.0, %v466_v7  ;;  %v477_v14 = vadd.f32 %v978_v10, %v1338_v9 }
 0x1d9   :  { %1093 = vrcp.f32 %v534_v8  ;;  %v532_v16 = vadd.f32 1.0, %v1072_v11  ;;  %v468_v17 = vpop.f32.mrf.mxu1 }
 0x1da   :  { %v1074_v18 = vpop.eup %1073  ;;  %1095 = vpow2.f32 %v524_v12  ;;  %v520_v19 = vmul.f32 1.442695, %v492_v13  ;;  %v469_v20 = vadd.f32 %v1338_v9, %v468_v17  ;;  %v495_v24 = vsub.f32 0.0, %v477_v14 }
 0x1db   :  { %1097 = vrcp.f32 %v532_v16  ;;  %v535_v21 = vadd.f32 1.0, %v1074_v18 }
 0x1dc   :  { %v1076_v22 = vpop.eup %1075  ;;  %v493_v25 = vsub.f32 0.0, %v469_v20  ;;  %1099 = vpow2.f32 %v520_v19  ;;  %v526_v32 = vmul.f32 1.442695, %v495_v24  ;;  %v631_v19 = vld [vmem:[#allocation2] sm:$0x1] }
 0x1dd   :  { %v533_v26 = vadd.f32 1.0, %v1076_v22  ;;  %1101 = vrcp.f32 %v535_v21 }
 0x1de   :  { %v1078_v27 = vpop.eup %1077  ;;  %v522_v28 = vmul.f32 1.442695, %v493_v25 }
 0x1df   :  { %v1080_v29 = vpop.eup %1079  ;;  %1103 = vrcp.f32 %v533_v26  ;;  %v569_v30 = vmul.f32 %v1078_v27, %v1359_v23 }
 0x1e0   :  { %v1082_v9 = vpop.eup %1081  ;;  %v538_v31 = vadd.f32 1.0, %v1080_v29  ;;  %1105 = vpow2.f32 %v522_v28 }
 0x1e1   :  { %v1084_v33 = vpop.eup %1083  ;;  %v589_v34 = vsel %vm109_vm0, %v569_v30, 0.0  ;;  %v567_v35 = vmul.f32 %v1082_v9, %v1359_v23 }
 0x1e2   :  { %v1086_v36 = vpop.eup %1085  ;;  %1107 = vrcp.f32 %v538_v31  ;;  %v536_v15 = vadd.f32 1.0, %v1084_v33  ;;  %590 = vadd.xlane.f32.xlu1 %v589_v34 }
 0x1e3   :  { %v1088_v37 = vpop.eup %1087  ;;  %v583_v38 = vsel %vm109_vm0, %v567_v35, 0.0  ;;  %v570_v39 = vmul.f32 %v1086_v36, %v1359_v23  ;;  %1109 = vpow2.f32 %v526_v32  ;;  %v637_v35 = vlaneseq }
 0x1e4   :  { %v1090_v40 = vpop.eup %1089  ;;  %v539_v41 = vadd.f32 1.0, %v1088_v37  ;;  %584 = vadd.xlane.f32.xlu0 %v583_v38  ;;  %1111 = vrcp.f32 %v536_v15 }
 0x1e5   :  { %v1092_v42 = vpop.eup %1091  ;;  %v592_v43 = vsel %vm109_vm0, %v570_v39, 0.0  ;;  %v568_v44 = vmul.f32 %v1090_v40, %v1359_v23  ;;  %v1394_v37 = vshrl.u32 %v637_v35, 7 }
 0x1e6   :  { %v1094_v45 = vpop.eup %1093  ;;  %1113 = vrcp.f32 %v539_v41  ;;  %v537_v46 = vadd.f32 1.0, %v1092_v42  ;;  %593 = vadd.xlane.f32.xlu1 %v592_v43 }
 0x1e7   :  { %v1096_v47 = vpop.eup %1095  ;;  %v586_v48 = vsel %vm109_vm0, %v568_v44, 0.0  ;;  %v573_v49 = vmul.f32 %v1094_v45, %v1359_v23 }
 0x1e8   :  { %v1098_v50 = vpop.eup %1097  ;;  %587 = vadd.xlane.f32.xlu0 %v586_v48  ;;  %1115 = vrcp.f32 %v537_v46  ;;  %v542_v51 = vadd.f32 1.0, %v1096_v47 }
 0x1e9   :  { %v1100_v52 = vpop.eup %1099  ;;  %v601_v54 = vsel %vm109_vm0, %v573_v49, 0.0  ;;  %v571_v55 = vmul.f32 %v1098_v50, %v1359_v23 }
 0x1ea   :  { %v1102_v53 = vpop.eup %1101  ;;  %1117 = vrcp.f32 %v542_v51  ;;  %v540_v57 = vadd.f32 1.0, %v1100_v52 }
 0x1eb   :  { %v595_v62 = vsel %vm109_vm0, %v571_v55, 0.0  ;;  %v574_v63 = vmul.f32 %v1102_v53, %v1359_v23 }
 0x1ec   :  { %v1104_v56 = vpop.eup %1103  ;;  %602 = vadd.xlane.f32.xlu0 %v601_v54  ;;  %1119 = vrcp.f32 %v540_v57 }
 0x1ed   :  { %v572_v58 = vmul.f32 %v1104_v56, %v1359_v23  ;;  %v1106_v59 = vpop.eup %1105  ;;  %v604_v5 = vsel %vm109_vm0, %v574_v63, 0.0 }
 0x1ee   :  { %v541_v1 = vadd.f32 1.0, %v1106_v59 }
 0x1ef   :  { %v1108_v60 = vpop.eup %1107  ;;  %v598_v61 = vsel %vm109_vm0, %v572_v58, 0.0 }
 0x1f0   :  { %599 = vadd.xlane.f32.xlu1 %v598_v61  ;;  %596 = vadd.xlane.f32.xlu0 %v595_v62  ;;  %v1110_v0 = vpop.eup %1109  ;;  %v577_v2 = vmul.f32 %v1108_v60, %v1359_v23  ;;  %1121 = vrcp.f32 %v541_v1 }
 0x1f1   :  { %v1112_v3 = vpop.eup %1111  ;;  %v543_v7 = vadd.f32 1.0, %v1110_v0 }
 0x1f2   :  { %v613_v8 = vsel %vm109_vm0, %v577_v2, 0.0  ;;  %v575_v10 = vmul.f32 %v1112_v3, %v1359_v23 }
 0x1f3   :  { %v1114_v4 = vpop.eup %1113  ;;  %1123 = vrcp.f32 %v543_v7 }
 0x1f4   :  { %605 = vadd.xlane.f32.xlu0 %v604_v5  ;;  %v578_v6 = vmul.f32 %v1114_v4, %v1359_v23  ;;  %v607_v12 = vsel %vm109_vm0, %v575_v10, 0.0 }
 0x1f5   :  { %v1116_v11 = vpop.eup %1115 }
 0x1f6   :  { %v576_v13 = vmul.f32 %v1116_v11, %v1359_v23  ;;  %v616_v30 = vsel %vm109_vm0, %v578_v6, 0.0 }
 0x1f7   :  { %v1118_v14 = vpop.eup %1117 }
 0x1f8   :  { %614 = vadd.xlane.f32.xlu0 %v613_v8  ;;  %v610_v16 = vsel %vm109_vm0, %v576_v13, 0.0  ;;  %v581_v17 = vmul.f32 %v1118_v14, %v1359_v23 }
 0x1f9   :  { %v1120_v18 = vpop.eup %1119 }
 0x1fa   :  { %v625_v20 = vsel %vm109_vm0, %v581_v17, 0.0  ;;  %v579_v21 = vmul.f32 %v1120_v18, %v1359_v23 }
 0x1fc   :  { %608 = vadd.xlane.f32.xlu0 %v607_v12  ;;  %v619_v24 = vsel %vm109_vm0, %v579_v21, 0.0 }
 0x1fd   :  { %v1122_v22 = vpop.eup %1121 }
 0x1fe   :  { %v580_v25 = vmul.f32 %v1122_v22, %v1359_v23 }
 0x200   :  { %611 = vadd.xlane.f32.xlu0 %v610_v16  ;;  %v1124_v26 = vpop.eup %1123  ;;  %v622_v27 = vsel %vm109_vm0, %v580_v25, 0.0 }
 0x201   :  { %634 = vperm.xlu1 %981, %v631_v19   ;;  %v582_v28 = vmul.f32 %v1124_v26, %v1359_v23  ;;  %v639_v23 = vsub.s32 0, %v1394_v37 }
 0x203   :  { %v628_v29 = vsel %vm109_vm0, %v582_v28, 0.0  ;;  %vm862_vm0 = vcmask 1048512  }
 0x204   :  { %626 = vadd.xlane.f32.xlu0 %v625_v20 }
 0x208   :  { %620 = vadd.xlane.f32.xlu0 %v619_v24 }
 0x20c   :  { %623 = vadd.xlane.f32.xlu0 %v622_v27 }
 0x210   :  { %629 = vadd.xlane.f32.xlu0 %v628_v29 }
 0x225   :  { %617 = vadd.xlane.f32.xlu1 %v616_v30 }
 0x26b   :  { %v591_v31 = vpop.xlane.xlu1 %590 }
 0x26d   :  { %v585_v9 = vpop.xlane.xlu0 %584 }
 0x26f   :  { %v594_v33 = vpop.xlane.xlu1 %593 }
 0x271   :  { %v588_v32 = vpop.xlane.xlu0 %587 }
 0x275   :  { %v603_v34 = vpop.xlane.xlu0 %602 }
 0x279   :  { %v600_v36 = vpop.xlane.xlu1 %599  ;;  %v597_v15 = vpop.xlane.xlu0 %596 }
 0x27d   :  { %v606_v38 = vpop.xlane.xlu0 %605  ;;  %v635_v39 = vpop.permute.xlu1 %634 }
 0x27e   :  { %v1397_v41 = vrot.slane %v635_v39, %v639_v23 }
 0x280   :  { %v641_v43 = vadd.f32 %v1397_v41, %v585_v9  ;;  %v642_v44 = vadd.f32 %v1397_v41, %v588_v32  ;;  %v643_v45 = vadd.f32 %v1397_v41, %v591_v31  ;;  %v644_v51 = vadd.f32 %v1397_v41, %v594_v33 }
 0x281   :  { %v615_v40 = vpop.xlane.xlu0 %614  ;;  %v645_v54 = vadd.f32 %v1397_v41, %v597_v15  ;;  %v646_v57 = vadd.f32 %v1397_v41, %v600_v36  ;;  %v647_v61 = vadd.f32 %v1397_v41, %v603_v34  ;;  %v648_v63 = vadd.f32 %v1397_v41, %v606_v38 }
 0x282   :  { %v657_v46 = vsub.f32 0.0, %v641_v43  ;;  %v658_v47 = vsub.f32 0.0, %v642_v44  ;;  %v659_v49 = vsub.f32 0.0, %v643_v45  ;;  %v660_v56 = vsub.f32 0.0, %v644_v51 }
 0x283   :  { %v661_v58 = vsub.f32 0.0, %v645_v54  ;;  %v662_v62 = vsub.f32 0.0, %v646_v57  ;;  %v663_v2 = vsub.f32 0.0, %v647_v61  ;;  %v664_v4 = vsub.f32 0.0, %v648_v63 }
 0x284   :  { %v673_v50 = vmul.f32 1.442695, %v657_v46  ;;  %v675_v52 = vmul.f32 1.442695, %v658_v47  ;;  %v677_v55 = vmul.f32 1.442695, %v659_v49  ;;  %v651_v13 = vadd.f32 %v1397_v41, %v615_v40 }
 0x285   :  { %v609_v42 = vpop.xlane.xlu0 %608  ;;  %v679_v59 = vmul.f32 1.442695, %v660_v56  ;;  %v681_v0 = vmul.f32 1.442695, %v661_v58  ;;  %v683_v3 = vmul.f32 1.442695, %v662_v62 }
 0x286   :  { %1125 = vpow2.f32 %v673_v50  ;;  %v649_v1 = vadd.f32 %v1397_v41, %v609_v42  ;;  %v685_v11 = vmul.f32 1.442695, %v663_v2  ;;  %v687_v12 = vmul.f32 1.442695, %v664_v4 }
 0x287   :  { %1127 = vpow2.f32 %v675_v52  ;;  %v667_v24 = vsub.f32 0.0, %v651_v13  ;;  %v1415_v36 = vand.u32 127, %v637_v35 }
 0x288   :  { %1129 = vpow2.f32 %v677_v55  ;;  %v665_v10 = vsub.f32 0.0, %v649_v1 }
 0x289   :  { %v612_v48 = vpop.xlane.xlu0 %611  ;;  %1131 = vpow2.f32 %v679_v59  ;;  %v693_v31 = vmul.f32 1.442695, %v667_v24  ;;  %v759_v46 = vadd.s32 4294967288, %v1415_v36  ;;  %v766_v50 = vadd.s32 4294967280, %v1415_v36 }
 0x28a   :  { %v650_v5 = vadd.f32 %v1397_v41, %v612_v48  ;;  %1133 = vpow2.f32 %v681_v0  ;;  %v689_v20 = vmul.f32 1.442695, %v665_v10  ;;  %v773_v63 = vadd.s32 4294967272, %v1415_v36 }
 0x28b   :  { %1135 = vpow2.f32 %v683_v3  ;;  %v769_v58 = vsub.s32 %v766_v50, %v1394_v37  ;;  %v780_v4 = vadd.s32 4294967264, %v1415_v36  ;;  %v829_v50 = vadd.s32 4294967208, %v1415_v36 }
 0x28c   :  { %v666_v14 = vsub.f32 0.0, %v650_v5  ;;  %1137 = vpow2.f32 %v685_v11  ;;  %v787_v11 = vadd.s32 4294967256, %v1415_v36 }
 0x28d   :  { %v627_v53 = vpop.xlane.xlu0 %626  ;;  %1139 = vpow2.f32 %v687_v12 }
 0x28e   :  { %v691_v25 = vmul.f32 1.442695, %v666_v14  ;;  %v655_v26 = vadd.f32 %v1397_v41, %v627_v53  ;;  %v757_v53 = vsub.s32 %v1415_v36, %v1394_v37 }
 0x290   :  { %v671_v32 = vsub.f32 0.0, %v655_v26  ;;  %v790_v26 = vsub.s32 %v787_v11, %v1394_v37 }
 0x291   :  { %v621_v60 = vpop.xlane.xlu0 %620 }
 0x292   :  { %v653_v16 = vadd.f32 %v1397_v41, %v621_v60  ;;  %v701_v40 = vmul.f32 1.442695, %v671_v32 }
 0x293   :  { %v1126_v7 = vpop.eup %1125 }
 0x294   :  { %v1128_v8 = vpop.eup %1127  ;;  %v705_v17 = vadd.f32 1.0, %v1126_v7  ;;  %v669_v27 = vsub.f32 0.0, %v653_v16  ;;  %v776_v7 = vsub.s32 %v773_v63, %v1394_v37  ;;  %v783_v16 = vsub.s32 %v780_v4, %v1394_v37 }
 0x295   :  { %v624_v6 = vpop.xlane.xlu0 %623  ;;  %v1130_v18 = vpop.eup %1129  ;;  %v706_v19 = vadd.f32 1.0, %v1128_v8 }
 0x296   :  { %v654_v21 = vadd.f32 %v1397_v41, %v624_v6  ;;  %v707_v28 = vadd.f32 1.0, %v1130_v18  ;;  %1141 = vrcp.f32 %v705_v17  ;;  %v1132_v30 = vpop.eup %1131  ;;  %v697_v33 = vmul.f32 1.442695, %v669_v27 }
 0x297   :  { %1143 = vrcp.f32 %v706_v19  ;;  %v1134_v34 = vpop.eup %1133  ;;  %v708_v38 = vadd.f32 1.0, %v1132_v30 }
 0x298   :  { %1145 = vpow2.f32 %v689_v20  ;;  %v670_v9 = vsub.f32 0.0, %v654_v21  ;;  %v1136_v39 = vpop.eup %1135  ;;  %v709_v43 = vadd.f32 1.0, %v1134_v34 }
 0x299   :  { %v630_v22 = vpop.xlane.xlu0 %629  ;;  %1147 = vpow2.f32 %v691_v25  ;;  %v710_v47 = vadd.f32 1.0, %v1136_v39  ;;  %v1138_v48 = vpop.eup %1137 }
 0x29a   :  { %v656_v29 = vadd.f32 %v1397_v41, %v630_v22  ;;  %1149 = vrcp.f32 %v707_v28  ;;  %v699_v23 = vmul.f32 1.442695, %v670_v9  ;;  %v1140_v49 = vpop.eup %1139  ;;  %v711_v55 = vadd.f32 1.0, %v1138_v48 }
 0x29b   :  { %1151 = vpow2.f32 %v693_v31  ;;  %v712_v60 = vadd.f32 1.0, %v1140_v49  ;;  %v794_v22 = vadd.s32 4294967248, %v1415_v36  ;;  %v801_v28 = vadd.s32 4294967240, %v1415_v36 }
 0x29c   :  { %v672_v15 = vsub.f32 0.0, %v656_v29  ;;  %1153 = vpow2.f32 %v697_v33  ;;  %v808_v9 = vadd.s32 4294967232, %v1415_v36 }
 0x29d   :  { %1155 = vrcp.f32 %v708_v38  ;;  %v797_v34 = vsub.s32 %v794_v22, %v1394_v37  ;;  %v804_v39 = vsub.s32 %v801_v28, %v1394_v37 }
 0x29e   :  { %v703_v44 = vmul.f32 1.442695, %v672_v15  ;;  %1157 = vpow2.f32 %v699_v23  ;;  %v815_v23 = vadd.s32 4294967224, %v1415_v36 }
 0x29f   :  { %1159 = vpow2.f32 %v701_v40 }
 0x2a0   :  { %1161 = vrcp.f32 %v709_v43  ;;  %v811_v43 = vsub.s32 %v808_v9, %v1394_v37 }
 0x2a1   :  { %1163 = vpow2.f32 %v703_v44 }
 0x2a2   :  { %1165 = vrcp.f32 %v710_v47 }
 0x2a3   :  { %v1142_v51 = vpop.eup %1141 }
 0x2a4   :  { %v1144_v54 = vpop.eup %1143  ;;  %v758_v61 = vrot.slane %v1142_v51, %v757_v53 }
 0x2a5   :  { %v1146_v56 = vpop.eup %1145 }
 0x2a6   :  { %v1148_v57 = vpop.eup %1147  ;;  %v713_v0 = vadd.f32 1.0, %v1146_v56  ;;  %v850_v56 = vadd.s32 4294967184, %v1415_v36 }
 0x2a7   :  { %v1150_v59 = vpop.eup %1149  ;;  %v714_v1 = vadd.f32 1.0, %v1148_v57 }
 0x2a8   :  { %v1152_v2 = vpop.eup %1151  ;;  %v770_v3 = vrot.slane %v1150_v59, %v769_v58  ;;  %v832_v58 = vsub.s32 %v829_v50, %v1394_v37  ;;  %v857_v59 = vadd.s32 4294967176, %v1415_v36  ;;  %v853_v4 = vsub.s32 %v850_v56, %v1394_v37 }
 0x2a9   :  { %v1154_v5 = vpop.eup %1153  ;;  %v715_v13 = vadd.f32 1.0, %v1152_v2 }
 0x2aa   :  { %v1156_v8 = vpop.eup %1155  ;;  %v717_v18 = vadd.f32 1.0, %v1154_v5 }
 0x2ab   :  { %v1158_v10 = vpop.eup %1157  ;;  %v777_v19 = vrot.slane %v1156_v8, %v776_v7  ;;  %v860_v7 = vsub.s32 %v857_v59, %v1394_v37 }
 0x2ac   :  { %v1160_v12 = vpop.eup %1159  ;;  %v718_v21 = vadd.f32 1.0, %v1158_v10 }
 0x2ad   :  { %v1162_v17 = vpop.eup %1161  ;;  %v719_v29 = vadd.f32 1.0, %v1160_v12 }
 0x2ae   :  { %v618_v42 = vpop.xlane.xlu1 %617  ;;  %v1164_v20 = vpop.eup %1163  ;;  %v784_v30 = vrot.slane %v1162_v17, %v783_v16 }
 0x2af   :  { %v652_v45 = vadd.f32 %v1397_v41, %v618_v42  ;;  %v762_v41 = vsub.s32 %v759_v46, %v1394_v37  ;;  %v1166_v24 = vpop.eup %1165  ;;  %v720_v31 = vadd.f32 1.0, %v1164_v20  ;;  %v818_v46 = vsub.s32 %v815_v23, %v1394_v37 }
 0x2b0   :  { %v791_v38 = vrot.slane %v1166_v24, %v790_v26 }
 0x2b1   :  { %v668_v35 = vsub.f32 0.0, %v652_v45  ;;  %v763_v62 = vrot.slane %v1144_v54, %v762_v41  ;;  %v843_v54 = vadd.s32 4294967192, %v1415_v36 }
 0x2b3   :  { %v695_v52 = vmul.f32 1.442695, %v668_v35  ;;  %v765_v6 = vsel %vm764_vm2, %v763_v62, %v758_v61  ;;  %v822_v35 = vadd.s32 4294967216, %v1415_v36 }
 0x2b4   :  { %v772_v14 = vsel %vm771_vm3, %v770_v3, %v765_v6 }
 0x2b5   :  { %1167 = vpow2.f32 %v695_v52  ;;  %v779_v25 = vsel %vm778_vm4, %v777_v19, %v772_v14  ;;  %v836_v52 = vadd.s32 4294967200, %v1415_v36 }
 0x2b6   :  { %1169 = vrcp.f32 %v711_v55  ;;  %v786_v33 = vsel %vm785_vm5, %v784_v30, %v779_v25  ;;  %v825_v55 = vsub.s32 %v822_v35, %v1394_v37 }
 0x2b7   :  { %1171 = vrcp.f32 %v712_v60  ;;  %v793_v40 = vsel %vm792_vm6, %v791_v38, %v786_v33  ;;  %v839_v62 = vsub.s32 %v836_v52, %v1394_v37 }
 0x2b8   :  { %1173 = vrcp.f32 %v713_v0 }
 0x2b9   :  { %1175 = vrcp.f32 %v714_v1  ;;  %v846_v1 = vsub.s32 %v843_v54, %v1394_v37 }
 0x2ba   :  { %1177 = vrcp.f32 %v715_v13 }
 0x2bb   :  { %1179 = vrcp.f32 %v717_v18 }
 0x2bc   :  { %1181 = vrcp.f32 %v718_v21 }
 0x2c2   :  { %v1168_v27 = vpop.eup %1167 }
 0x2c3   :  { %v716_v32 = vadd.f32 1.0, %v1168_v27  ;;  %v1170_v15 = vpop.eup %1169 }
 0x2c4   :  { %v1172_v42 = vpop.eup %1171  ;;  %v798_v44 = vrot.slane %v1170_v15, %v797_v34 }
 0x2c5   :  { %1183 = vrcp.f32 %v716_v32  ;;  %v1174_v45 = vpop.eup %1173  ;;  %v805_v49 = vrot.slane %v1172_v42, %v804_v39 }
 0x2c6   :  { %1185 = vrcp.f32 %v719_v29  ;;  %v1176_v47 = vpop.eup %1175  ;;  %v800_v48 = vsel %vm799_vm7, %v798_v44, %v793_v40  ;;  %v812_v51 = vrot.slane %v1174_v45, %v811_v43 }
 0x2c7   :  { %1187 = vrcp.f32 %v720_v31  ;;  %v807_v53 = vsel %vm806_vm8, %v805_v49, %v800_v48  ;;  %v819_v41 = vrot.slane %v1176_v47, %v818_v46  ;;  %v1178_v57 = vpop.eup %1177 }
 0x2c8   :  { %v1180_v60 = vpop.eup %1179  ;;  %v814_v61 = vsel %vm813_vm9, %v812_v51, %v807_v53  ;;  %v826_v3 = vrot.slane %v1178_v57, %v825_v55 }
 0x2c9   :  { %v1182_v63 = vpop.eup %1181  ;;  %v821_v0 = vsel %vm820_vm10, %v819_v41, %v814_v61  ;;  %v840_v10 = vrot.slane %v1180_v60, %v839_v62 }
 0x2ca   :  { %v828_v8 = vsel %vm827_vm11, %v826_v3, %v821_v0  ;;  %v847_v12 = vrot.slane %v1182_v63, %v846_v1 }
 0x2d2   :  { %v1184_v2 = vpop.eup %1183 }
 0x2d3   :  { %v1186_v5 = vpop.eup %1185  ;;  %v833_v6 = vrot.slane %v1184_v2, %v832_v58 }
 0x2d4   :  { %v1188_v36 = vpop.eup %1187  ;;  %v854_v14 = vrot.slane %v1186_v5, %v853_v4 }
 0x2d5   :  { %v835_v11 = vsel %vm834_vm12, %v833_v6, %v828_v8  ;;  %v861_v17 = vrot.slane %v1188_v36, %v860_v7 }
 0x2d6   :  { %v842_v13 = vsel %vm841_vm13, %v840_v10, %v835_v11 }
 0x2d7   :  { %v849_v16 = vsel %vm848_vm14, %v847_v12, %v842_v13 }
 0x2d8   :  { %v856_v18 = vsel %vm855_vm15, %v854_v14, %v849_v16 }
 0x2d9   :  { %v863_v19 = vsel %vm862_vm0, %v861_v17, %v856_v18 }
 0x2da   :  { %865 = vst [vmem:[#allocation3] sm:$0x1] %v863_v19 }
 0x2db   :  { %1200 = shalt.err (!%p1197_p4)
}
 0x2dc   :  { %875 = dma.vmem_to_hbm [thread:$0]  %s873_s8, 16, %s1460_s7, [#allocation4]  }
 0x2dd   :  { %1209 = dma.done.wait [#allocation4], 16  }
 0x2de   :  { %1210 = vsyncadd [#allocation4], 4294967280 }
 0x2df   :  { %879 = vsyncpa [#allocation4], 1 }

</bundles_post_ra>
